<compile_context>
chip_gen: v6e
topology: v6e:2x2x1
jax: 0.10.0
libtpu: 0.0.40
codegen_flags: <defaults>
</compile_context>

<pallas_src>
import math

import jax
import jax.numpy as jnp
from jax.experimental import pallas as pl
from jax.experimental.pallas import tpu as pltpu

B = 2            # batch
S = 8            # sequence length
D_MODEL = 32     # d_model
VOCAB = 128      # vocab_size (lane-dense contraction dim for the one-hot matmul)
N = B * S        # 16 tokens total
SCALE = math.sqrt(D_MODEL)


def embed_kernel(ids_ref, table_ref, o_ref):
    """Fused embedding lookup (one-hot MXU matmul) + sqrt(d_model) scaling."""
    ids = ids_ref[...]                                          # (N, 1) int32
    vocab_iota = jax.lax.broadcasted_iota(jnp.int32, (N, VOCAB), 1)
    one_hot = (vocab_iota == ids).astype(table_ref.dtype)       # (N, V)
    emb = jnp.dot(one_hot, table_ref[...],
                  preferred_element_type=jnp.float32)           # (N, D) on MXU
    o_ref[...] = (emb * SCALE).astype(o_ref.dtype)


def input_embeddings_forward(token_ids, table):
    """token_ids: (B, S) int32, table: (VOCAB, D_MODEL) -> (B, S, D_MODEL)."""
    ids_col = token_ids.reshape(N, 1).astype(jnp.int32)
    out_flat = pl.pallas_call(
        embed_kernel,
        out_shape=jax.ShapeDtypeStruct((N, D_MODEL), table.dtype),
        grid_spec=pltpu.PrefetchScalarGridSpec(
            num_scalar_prefetch=0,
            grid=(1,),
            in_specs=[pl.BlockSpec((N, 1), lambda i: (0, 0)),
                      pl.BlockSpec((VOCAB, D_MODEL), lambda i: (0, 0))],
            out_specs=pl.BlockSpec((N, D_MODEL), lambda i: (0, 0)),
        ),
        compiler_params=pltpu.CompilerParams(
            dimension_semantics=("arbitrary",)),
    )(ids_col, table)
    return out_flat.reshape(B, S, D_MODEL)


def reference_forward(token_ids, table):
    """Plain-JAX reference mirroring the PyTorch module."""
    return table[token_ids] * SCALE


if __name__ == "__main__":
    key = jax.random.PRNGKey(0)
    k_tab, k_ids = jax.random.split(key)

    table = jax.random.normal(k_tab, (VOCAB, D_MODEL), jnp.float32)
    token_ids = jax.random.randint(k_ids, (B, S), 0, VOCAB, dtype=jnp.int32)

    out = input_embeddings_forward(token_ids, table)
    out = jax.block_until_ready(out)

    ref = reference_forward(token_ids, table)
    assert out.shape == (B, S, D_MODEL)
    assert jnp.allclose(out, ref, atol=1e-5, rtol=1e-5), "mismatch vs reference"

    print("KERNEL_OK")
</pallas_src>

<mosaic_0001>
module attributes {stable_mosaic.version = 11 : i64} {
  func.func @embed_kernel(%arg0: i32, %arg1: memref<16x1xi32, #tpu.memory_space<vmem>>, %arg2: memref<128x32xf32, #tpu.memory_space<vmem>>, %arg3: memref<16x32xf32, #tpu.memory_space<vmem>>) attributes {dimension_semantics = [#tpu.dimension_semantics<arbitrary>], iteration_bounds = array<i64: 1>, scalar_prefetch = 0 : i64, scratch_operands = 0 : i64, tpu.core_type = #tpu.core_type<tc>, window_params = [{pipeline_mode = #tpu.pipeline_mode<synchronous>, transform_indices = @transform_0, window_bounds = array<i64: 16, 1>}, {pipeline_mode = #tpu.pipeline_mode<synchronous>, transform_indices = @transform_1, window_bounds = array<i64: 128, 32>}, {pipeline_mode = #tpu.pipeline_mode<synchronous>, transform_indices = @transform_2, window_bounds = array<i64: 16, 32>}]} {
    %c0 = arith.constant 0 : index
    %c0_0 = arith.constant 0 : index
    %0 = vector.load %arg1[%c0, %c0_0] : memref<16x1xi32, #tpu.memory_space<vmem>>, vector<16x1xi32>
    %1 = tpu.iota {dimensions = array<i32: 1>} : vector<16x128xi32>
    %2 = vector.broadcast %0 : vector<16x1xi32> to vector<16x128xi32>
    %3 = arith.cmpi eq, %1, %2 : vector<16x128xi32>
    %4 = arith.extui %3 : vector<16x128xi1> to vector<16x128xi32>
    %5 = arith.sitofp %4 : vector<16x128xi32> to vector<16x128xf32>
    %c0_1 = arith.constant 0 : index
    %c0_2 = arith.constant 0 : index
    %6 = vector.load %arg2[%c0_1, %c0_2] : memref<128x32xf32, #tpu.memory_space<vmem>>, vector<128x32xf32>
    %cst = arith.constant dense<0.000000e+00> : vector<16x32xf32>
    %7 = tpu.matmul %5, %6, %cst {dimension_numbers = #tpu.dot_dimension_numbers<[1], [0], [0], [1], [0, 0, 1, 1], [], []>} : vector<16x128xf32>, vector<128x32xf32>, vector<16x32xf32> -> vector<16x32xf32>
    %cst_3 = arith.constant 5.65685415 : f32
    %8 = vector.broadcast %cst_3 : f32 to vector<16x32xf32>
    %9 = arith.mulf %7, %8 : vector<16x32xf32>
    %c0_4 = arith.constant 0 : index
    %c0_5 = arith.constant 0 : index
    %10 = vector.load %arg3[%c0_4, %c0_5] : memref<16x32xf32, #tpu.memory_space<vmem>>, vector<16x32xf32>
    tpu.vector_store %arg3[%c0_4, %c0_5], %9 {strides = array<i32>} : memref<16x32xf32, #tpu.memory_space<vmem>>, vector<16x32xf32>,
    return
  }
  func.func @transform_0(%arg0: i32) -> (i32, i32) {
    %c0_i32 = arith.constant 0 : i32
    %c0_i32_0 = arith.constant 0 : i32
    %c0_i32_1 = arith.constant 0 : i32
    return %c0_i32, %c0_i32_0 : i32, i32
  }
  func.func @transform_1(%arg0: i32) -> (i32, i32) {
    %c0_i32 = arith.constant 0 : i32
    %c0_i32_0 = arith.constant 0 : i32
    %c0_i32_1 = arith.constant 0 : i32
    return %c0_i32, %c0_i32_0 : i32, i32
  }
  func.func @transform_2(%arg0: i32) -> (i32, i32) {
    %c0_i32 = arith.constant 0 : i32
    %c0_i32_0 = arith.constant 0 : i32
    %c0_i32_1 = arith.constant 0 : i32
    return %c0_i32, %c0_i32_0 : i32, i32
  }
}

</mosaic_0001>

<bundles_post_ra>
// kernel: tpu_custom_call.1
= control target key start
LH: loop header
LB: loop body
LE: loop exit
PB: predicated region body
PF: predicated region fallthrough
CT: control target
= control target key end

     0   :  { %v225_v2 = vmov 0   ;;  %s302_s0 = inlined_call_operand.vmem [shape: s32[16,1], index: 0, kind: input, shape index: {}]   ;;  %s303_s1 = inlined_call_operand.vmem [shape: f32[128,32], index: 1, kind: input, shape index: {}]   ;;  %s304_s2 = inlined_call_operand.hbm [shape: f32[16,32], index: 2, kind: output, shape index: {}]  }
   0x1   :  { %v12_v0 = vld [vmem:[%s302_s0] sm:$0xff]  ;;  %v43_v1 = vld [vmem:[%s303_s1 + $0x78] sm:$0xff]  ;;  %202 = vset.pattern.permute.xlu0 %v225_v2  ;;  %v42_v3 = vld [vmem:[%s303_s1 + $0x70] sm:$0xff] }
   0x2   :  { %162 = vmatprep.subr.mxu0 %v43_v1  ;;  %17 = vperm.xlu0 %202, %v12_v0   ;;  %v41_v4 = vld [vmem:[%s303_s1 + $0x68] sm:$0xff]  ;;  %v40_v6 = vld [vmem:[%s303_s1 + $0x60] sm:$0xff]  ;;  %v39_v7 = vld [vmem:[%s303_s1 + $0x58] sm:$0xff] }
   0x3   :  { %163 = vmatpush3.msra.mxu0 %v43_v1  ;;  %v13_v5 = vld [vmem:[%s302_s0 + $0x8] sm:$0xff] }
   0x4   :  { %164 = vmatprep.subr.mxu0 %v42_v3 }
   0x5   :  { %165 = vmatpush3.msra.mxu0 %v42_v3 }
   0x6   :  { %166 = vmatprep.subr.mxu0 %v41_v4  ;;  %20 = vperm.xlu0 %202, %v13_v5  }
   0x7   :  { %167 = vmatpush3.msra.mxu0 %v41_v4 }
   0x8   :  { %7 = vsyncpa [#allocation3], 0  ;;  %168 = vmatprep.subr.mxu0 %v40_v6  ;;  %v38_v8 = vld [vmem:[%s303_s1 + $0x50] sm:$0xff]  ;;  %v37_v9 = vld [vmem:[%s303_s1 + $0x48] sm:$0xff]  ;;  %v14_v19 = vlaneseq  ;;  %v226_v22 = vmov 1.0   ;;  %s227_s16 = smov [#allocation2]  }
   0x9   :  { %169 = vmatpush3.msra.mxu0 %v40_v6  ;;  %v36_v10 = vld [vmem:[%s303_s1 + $0x40] sm:$0xff]  ;;  %v35_v11 = vld [vmem:[%s303_s1 + $0x38] sm:$0xff]  ;;  %v34_v12 = vld [vmem:[%s303_s1 + $0x30] sm:$0xff]  ;;  %s129_s17 = sshll.u32 %s227_s16, 4  ;;  %vm121_vm2 = vcmask 261120   ;;  %s130_s17 = int_to_ptr.vmem [resolvable:$true] %s129_s17 }
   0xa   :  { %170 = vmatprep.subr.mxu0 %v39_v7  ;;  %v33_v13 = vld [vmem:[%s303_s1 + $0x28] sm:$0xff]  ;;  %v32_v14 = vld [vmem:[%s303_s1 + $0x20] sm:$0xff]  ;;  %v31_v15 = vld [vmem:[%s303_s1 + $0x18] sm:$0xff]  ;;  %v15_v20 = vand.u32 127, %v14_v19  ;;  %p208_p1 = scmp.lt.s32.totalorder %s130_s17, %s130_s17 }
   0xb   :  { %171 = vmatpush3.msra.mxu0 %v39_v7  ;;  %v30_v16 = vld [vmem:[%s303_s1 + $0x10] sm:$0xff]  ;;  %v29_v17 = vld [vmem:[%s303_s1 + $0x8] sm:$0xff]  ;;  %v28_v18 = vld [vmem:[%s303_s1] sm:$0xff]  ;;  %s203_s1 = scalar_lea.vmem %s130_s17, 256 }
   0xc   :  { %172 = vmatprep.subr.mxu0 %v38_v8  ;;  %p204_p0 = scmp.ne.s32.totalorder %s130_s17, %s203_s1  ;;  %p209_p2 = scmp.lt.s32.totalorder %s203_s1, %s203_s1 }
   0xd   :  { %173 = vmatpush3.msra.mxu0 %v38_v8 }
   0xe   :  { %174 = vmatprep.subr.mxu0 %v37_v9  ;;  %p210_p3 = por %p209_p2, %p208_p1 }
   0xf   :  { %175 = vmatpush3.msra.mxu0 %v37_v9 }
  0x10   :  { %176 = vmatprep.subr.mxu0 %v36_v10  ;;  %p211_p4 = pnand %p210_p3, %p204_p0 }
  0x11   :  { %177 = vmatpush3.msra.mxu0 %v36_v10 }
  0x12   :  { %178 = vmatprep.subr.mxu0 %v35_v11 }
  0x13   :  { %179 = vmatpush3.msra.mxu0 %v35_v11 }
  0x14   :  { %180 = vmatprep.subr.mxu0 %v34_v12 }
  0x15   :  { %181 = vmatpush3.msra.mxu0 %v34_v12 }
  0x16   :  { %182 = vmatprep.subr.mxu0 %v33_v13 }
  0x17   :  { %183 = vmatpush3.msra.mxu0 %v33_v13 }
  0x18   :  { %184 = vmatprep.subr.mxu0 %v32_v14 }
  0x19   :  { %185 = vmatpush3.msra.mxu0 %v32_v14 }
  0x1a   :  { %186 = vmatprep.subr.mxu0 %v31_v15 }
  0x1b   :  { %187 = vmatpush3.msra.mxu0 %v31_v15 }
  0x1c   :  { %188 = vmatprep.subr.mxu0 %v30_v16 }
  0x1d   :  { %189 = vmatpush3.msra.mxu0 %v30_v16 }
  0x1e   :  { %190 = vmatprep.subr.mxu0 %v29_v17 }
  0x1f   :  { %191 = vmatpush3.msra.mxu0 %v29_v17 }
  0x20   :  { %192 = vmatprep.subr.mxu0 %v28_v18 }
  0x21   :  { %193 = vmatpush3.msra.mxu0 %v28_v18 }
  0x7d   :  { %v18_v21 = vpop.permute.xlu0 %17 }
  0x7e   :  { %vm22_vm0 = vcmp.eq.s32.totalorder %v15_v20, %v18_v21 }
  0x7f   :  { %194 = vmatprep.mubr.msk.f32.mxu0 %vm22_vm0, %v226_v22 }
  0x81   :  { %v21_v23 = vpop.permute.xlu0 %20 }
  0x82   :  { %vm23_vm1 = vcmp.eq.s32.totalorder %v15_v20, %v21_v23 }
  0x83   :  { %195 = vmatmul.mubr.msk.f32.vlgmr.msra.gmra.mxu0 %vm23_vm1, %v226_v22 }
 0x143   :  { %v196_v24 = vpop.f32.mrf.mxu0 }
 0x144   :  { %v120_v25 = vmul.f32 5.656854, %v196_v24 }
 0x145   :  { %v110_v26 = vpop.f32.mrf.mxu0 }
 0x146   :  { %123 = vst.msk [vmem:[#allocation2 + $0x8] sm:$0xff] %vm121_vm2, %v120_v25  ;;  %v119_v27 = vmul.f32 5.656854, %v110_v26 }
 0x148   :  { %122 = vst.msk [vmem:[#allocation2] sm:$0xff] %vm121_vm2, %v119_v27 }
 0x149   :  { %214 = shalt.err (!%p211_p4)
}
 0x14a   :  { %s228_s18 = smov 128   ;;  %s229_s19 = smov 8  }
 0x14b   :  { %135 = dma.vmem_to_hbm [thread:$0]  %s130_s17, 256, %s304_s2, [#allocation3], %s228_s18, %s228_s18, %s229_s19  }
 0x14c   :  { %223 = dma.done.wait [#allocation3], 256  }
 0x14d   :  { %224 = vsyncadd [#allocation3], 4294967040 }
 0x14e   :  { %139 = vsyncpa [#allocation3], 1 }

</bundles_post_ra>
